<compile_context>
chip_gen: v6e
topology: v6e:2x2x1
jax: 0.10.0
libtpu: 0.0.40
codegen_flags: <defaults>
</compile_context>

<pallas_src>
from functools import partial

import jax
import jax.numpy as jnp
from jax.experimental import pallas as pl
from jax.experimental.pallas import tpu as pltpu

_LANES = 128      # vreg lane width; all fused weights are padded to this
_HIDDEN = 32      # per-head hidden size (fused hidden = 64)


def _round_up(n, m):
    return ((n + m - 1) // m) * m


def _a2c_fused_kernel(x_ref, slab_ref, out_ref):
    """Fused actor+critic forward: 3 matmuls + 3 bias/ReLU steps.

    x_ref   : [n_envs, F_pad]   (F_pad multiple of 8)
    slab_ref: [rows, 128] packed parameters:
                rows [0, F_pad)                  -> fused W1 (lanes 0:64 live)
                rows [F_pad, F_pad+128)          -> fused W2 (block-diagonal)
                rows [F_pad+128, F_pad+256)      -> fused W3 (cols 0:1+A live)
                rows [F_pad+256, F_pad+259)      -> biases b1, b2, b3
    out_ref : [n_envs, 128]; col 0 = state value, cols 1:1+A = action logits,
              remaining lanes are exact zeros.
    """
    f_pad = x_ref.shape[1]
    w2_off = f_pad
    w3_off = f_pad + _LANES
    b_off = f_pad + 2 * _LANES

    x = x_ref[...]
    w1 = slab_ref[0:f_pad, :]
    w2 = slab_ref[w2_off:w2_off + _LANES, :]
    w3 = slab_ref[w3_off:w3_off + _LANES, :]
    b = slab_ref[b_off:b_off + 3, :]          # single load, rows 0/1/2 = b1/b2/b3

    h = jnp.maximum(
        jnp.dot(x, w1, preferred_element_type=jnp.float32) + b[0:1, :], 0.0)
    h = jnp.maximum(
        jnp.dot(h, w2, preferred_element_type=jnp.float32) + b[1:2, :], 0.0)
    out_ref[...] = (
        jnp.dot(h, w3, preferred_element_type=jnp.float32) + b[2:3, :])


@partial(jax.jit, static_argnums=(2,))
def a2c_forward(x, slab, n_actions):
    """Returns (state_values [n_envs, 1], action_logits [n_envs, n_actions])."""
    n_envs, n_features = x.shape
    f_pad = _round_up(n_features, 8)
    if f_pad != n_features:
        x = jnp.pad(x, ((0, 0), (0, f_pad - n_features)))

    vmem_spec = pl.BlockSpec(memory_space=pltpu.MemorySpace.VMEM)

    # Shapes are tiny (batch=8, fused hidden=64): everything is a single
    # VMEM-resident block, no grid / tiling needed.  If n_envs ever grows large,
    # add a "parallel" batch grid axis here to use v7x's second TensorCore.
    out = pl.pallas_call(
        _a2c_fused_kernel,
        out_shape=jax.ShapeDtypeStruct((n_envs, _LANES), jnp.float32),
        in_specs=[vmem_spec, vmem_spec],
        out_specs=vmem_spec,
    )(x, slab)

    state_values = out[:, 0:1]
    action_logits = out[:, 1:1 + n_actions]
    return state_values, action_logits


def _init_linear(key, fan_in, fan_out):
    """Deterministic init mimicking nn.Linear default (uniform in +-1/sqrt(fan_in)).

    Weight is returned already transposed to [fan_in, fan_out]; bias is [1, fan_out].
    """
    kw, kb = jax.random.split(key)
    bound = 1.0 / jnp.sqrt(jnp.float32(fan_in))
    w = jax.random.uniform(kw, (fan_in, fan_out), jnp.float32, -bound, bound)
    b = jax.random.uniform(kb, (1, fan_out), jnp.float32, -bound, bound)
    return w, b


def _make_params(key, n_features, n_actions, hidden=_HIDDEN):
    keys = jax.random.split(key, 6)
    # critic: F -> 32 -> 32 -> 1
    cw1, cb1 = _init_linear(keys[0], n_features, hidden)
    cw2, cb2 = _init_linear(keys[1], hidden, hidden)
    cw3, cb3 = _init_linear(keys[2], hidden, 1)
    # actor: F -> 32 -> 32 -> n_actions
    aw1, ab1 = _init_linear(keys[3], n_features, hidden)
    aw2, ab2 = _init_linear(keys[4], hidden, hidden)
    aw3, ab3 = _init_linear(keys[5], hidden, n_actions)
    critic = (cw1, cb1, cw2, cb2, cw3, cb3)
    actor = (aw1, ab1, aw2, ab2, aw3, ab3)
    return critic, actor


def _fuse_params(critic, actor, n_features, n_actions, hidden=_HIDDEN):
    """Packs both heads into one lane-padded [rows, 128] f32 slab (single DMA)."""
    cw1, cb1, cw2, cb2, cw3, cb3 = critic
    aw1, ab1, aw2, ab2, aw3, ab3 = actor
    h2 = 2 * hidden
    f_pad = _round_up(n_features, 8)

    # Layer 1: [F_pad, 128]; lanes 0:32 critic, 32:64 actor, rest zero.
    w1 = jnp.zeros((f_pad, _LANES), jnp.float32)
    w1 = w1.at[:n_features, :hidden].set(cw1)
    w1 = w1.at[:n_features, hidden:h2].set(aw1)

    # Layer 2: block-diagonal [128, 128] so the two heads stay independent.
    w2 = jnp.zeros((_LANES, _LANES), jnp.float32)
    w2 = w2.at[:hidden, :hidden].set(cw2)
    w2 = w2.at[hidden:h2, hidden:h2].set(aw2)

    # Layer 3: critic rows -> output col 0; actor rows -> cols 1:1+A.
    w3 = jnp.zeros((_LANES, _LANES), jnp.float32)
    w3 = w3.at[:hidden, 0:1].set(cw3)
    w3 = w3.at[hidden:h2, 1:1 + n_actions].set(aw3)

    # Biases: [3, 128]; padded lanes are zero so padded activations stay zero.
    b = jnp.zeros((3, _LANES), jnp.float32)
    b = b.at[0, :hidden].set(cb1[0]).at[0, hidden:h2].set(ab1[0])
    b = b.at[1, :hidden].set(cb2[0]).at[1, hidden:h2].set(ab2[0])
    b = b.at[2, 0:1].set(cb3[0]).at[2, 1:1 + n_actions].set(ab3[0])

    total_rows = _round_up(f_pad + 2 * _LANES + 3, 8)
    slab = jnp.zeros((total_rows, _LANES), jnp.float32)
    slab = slab.at[:f_pad].set(w1)
    slab = slab.at[f_pad:f_pad + _LANES].set(w2)
    slab = slab.at[f_pad + _LANES:f_pad + 2 * _LANES].set(w3)
    slab = slab.at[f_pad + 2 * _LANES:f_pad + 2 * _LANES + 3].set(b)
    return slab


def _reference_forward(x, critic, actor):
    """Plain-JAX reference of the unfused forward pass (for verification)."""
    def mlp(params):
        w1, b1, w2, b2, w3, b3 = params
        h = jnp.maximum(x @ w1 + b1, 0.0)
        h = jnp.maximum(h @ w2 + b2, 0.0)
        return h @ w3 + b3
    return mlp(critic), mlp(actor)


if __name__ == "__main__":
    n_envs = 8        # batch of parallel environments
    n_features = 16   # state feature dim
    n_actions = 4     # discrete action space size

    key = jax.random.PRNGKey(0)
    k_x, k_p = jax.random.split(key)

    x = jax.random.normal(k_x, (n_envs, n_features), dtype=jnp.float32)
    critic_params, actor_params = _make_params(k_p, n_features, n_actions)

    # Parameter slab is built once and reused across calls (weights are static
    # between optimizer steps), so each forward moves just x + one slab.
    slab = jax.block_until_ready(
        _fuse_params(critic_params, actor_params, n_features, n_actions))

    state_values, action_logits = a2c_forward(x, slab, n_actions)
    jax.block_until_ready((state_values, action_logits))

    ref_values, ref_logits = _reference_forward(x, critic_params, actor_params)
    assert state_values.shape == (n_envs, 1)
    assert action_logits.shape == (n_envs, n_actions)
    assert jnp.allclose(state_values, ref_values, atol=1e-5, rtol=1e-5)
    assert jnp.allclose(action_logits, ref_logits, atol=1e-5, rtol=1e-5)

    print("KERNEL_OK")
</pallas_src>

<mosaic_0001>
module attributes {stable_mosaic.version = 11 : i64} {
  func.func @_a2c_fused_kernel(%arg0: memref<8x16xf32, #tpu.memory_space<vmem>>, %arg1: memref<280x128xf32, #tpu.memory_space<vmem>>, %arg2: memref<8x128xf32, #tpu.memory_space<vmem>>) attributes {dimension_semantics = [], scalar_prefetch = 0 : i64, scratch_operands = 0 : i64, tpu.core_type = #tpu.core_type<tc>} {
    %c0 = arith.constant 0 : index
    %c0_0 = arith.constant 0 : index
    %0 = vector.load %arg0[%c0, %c0_0] : memref<8x16xf32, #tpu.memory_space<vmem>>, vector<8x16xf32>
    %c0_1 = arith.constant 0 : index
    %c0_2 = arith.constant 0 : index
    %1 = vector.load %arg1[%c0_1, %c0_2] : memref<280x128xf32, #tpu.memory_space<vmem>>, vector<16x128xf32>
    %c16 = arith.constant 16 : index
    %c0_3 = arith.constant 0 : index
    %2 = vector.load %arg1[%c16, %c0_3] : memref<280x128xf32, #tpu.memory_space<vmem>>, vector<128x128xf32>
    %c144 = arith.constant 144 : index
    %c0_4 = arith.constant 0 : index
    %3 = vector.load %arg1[%c144, %c0_4] : memref<280x128xf32, #tpu.memory_space<vmem>>, vector<128x128xf32>
    %c272 = arith.constant 272 : index
    %c0_5 = arith.constant 0 : index
    %4 = vector.load %arg1[%c272, %c0_5] : memref<280x128xf32, #tpu.memory_space<vmem>>, vector<3x128xf32>
    %cst = arith.constant dense<0.000000e+00> : vector<8x128xf32>
    %5 = tpu.matmul %0, %1, %cst {dimension_numbers = #tpu.dot_dimension_numbers<[1], [0], [0], [1], [0, 0, 1, 1], [], []>} : vector<8x16xf32>, vector<16x128xf32>, vector<8x128xf32> -> vector<8x128xf32>
    %6 = vector.extract_strided_slice %4 {offsets = [0, 0], sizes = [1, 128], strides = [1, 1]} : vector<3x128xf32> to vector<1x128xf32>
    %7 = vector.broadcast %6 : vector<1x128xf32> to vector<8x128xf32>
    %8 = arith.addf %5, %7 : vector<8x128xf32>
    %cst_6 = arith.constant 0.000000e+00 : f32
    %9 = vector.broadcast %cst_6 : f32 to vector<8x128xf32>
    %10 = arith.maximumf %8, %9 : vector<8x128xf32>
    %cst_7 = arith.constant dense<0.000000e+00> : vector<8x128xf32>
    %11 = tpu.matmul %10, %2, %cst_7 {dimension_numbers = #tpu.dot_dimension_numbers<[1], [0], [0], [1], [0, 0, 1, 1], [], []>} : vector<8x128xf32>, vector<128x128xf32>, vector<8x128xf32> -> vector<8x128xf32>
    %12 = vector.extract_strided_slice %4 {offsets = [1, 0], sizes = [1, 128], strides = [1, 1]} : vector<3x128xf32> to vector<1x128xf32>
    %13 = vector.broadcast %12 : vector<1x128xf32> to vector<8x128xf32>
    %14 = arith.addf %11, %13 : vector<8x128xf32>
    %cst_8 = arith.constant 0.000000e+00 : f32
    %15 = vector.broadcast %cst_8 : f32 to vector<8x128xf32>
    %16 = arith.maximumf %14, %15 : vector<8x128xf32>
    %cst_9 = arith.constant dense<0.000000e+00> : vector<8x128xf32>
    %17 = tpu.matmul %16, %3, %cst_9 {dimension_numbers = #tpu.dot_dimension_numbers<[1], [0], [0], [1], [0, 0, 1, 1], [], []>} : vector<8x128xf32>, vector<128x128xf32>, vector<8x128xf32> -> vector<8x128xf32>
    %18 = vector.extract_strided_slice %4 {offsets = [2, 0], sizes = [1, 128], strides = [1, 1]} : vector<3x128xf32> to vector<1x128xf32>
    %19 = vector.broadcast %18 : vector<1x128xf32> to vector<8x128xf32>
    %20 = arith.addf %17, %19 : vector<8x128xf32>
    %c0_10 = arith.constant 0 : index
    %c0_11 = arith.constant 0 : index
    %21 = vector.load %arg2[%c0_10, %c0_11] : memref<8x128xf32, #tpu.memory_space<vmem>>, vector<8x128xf32>
    tpu.vector_store %arg2[%c0_10, %c0_11], %20 {strides = array<i32>} : memref<8x128xf32, #tpu.memory_space<vmem>>, vector<8x128xf32>,
    return
  }
}

</mosaic_0001>

<bundles_post_ra>
// kernel: a2c_forward.1
= control target key start
LH: loop header
LB: loop body
LE: loop exit
PB: predicated region body
PF: predicated region fallthrough
CT: control target
= control target key end

     0   :  { %7 = vsyncpa [#allocation3], 0  ;;  %s543_s0 = inlined_call_operand.hbm [shape: f32[8,16], index: 0, kind: input, shape index: {}]   ;;  %s544_s1 = inlined_call_operand.hbm [shape: f32[280,128], index: 1, kind: input, shape index: {}]   ;;  %s545_s2 = inlined_call_operand.vmem [shape: f32[8,128], index: 2, kind: output, shape index: {}]  }
   0x1   :  { %8 = vsyncpa [#allocation5], 0  ;;  %s473_s9 = smov [#allocation2]   ;;  %s474_s11 = smov [#allocation4]  }
   0x2   :  { %s15_s10 = sshll.u32 %s473_s9, 4  ;;  %s24_s12 = sshll.u32 %s474_s11, 4  ;;  %s16_s10 = int_to_ptr.vmem [resolvable:$true] %s15_s10  ;;  %s25_s12 = int_to_ptr.vmem [resolvable:$true] %s24_s12 }
   0x3   :  { %s437_s13 = scalar_lea.vmem %s16_s10, 128  ;;  %p442_p1 = scmp.lt.s32.totalorder %s16_s10, %s16_s10 }
   0x4   :  { %p438_p0 = scmp.ne.s32.totalorder %s16_s10, %s437_s13  ;;  %p443_p2 = scmp.lt.s32.totalorder %s437_s13, %s437_s13 }
   0x6   :  { %p444_p3 = por %p443_p2, %p442_p1 }
   0x8   :  { %p445_p4 = pnand %p444_p3, %p438_p0 }
   0xa   :  { %448 = shalt.err (!%p445_p4)
}
   0xb   :  { %18 = dma.hbm_to_vmem [thread:$0]  %s543_s0, 128, %s16_s10, [#allocation3]  }
   0xc   :  { %s457_s16 = scalar_lea.vmem %s25_s12, 4480  ;;  %p462_p6 = scmp.lt.s32.totalorder %s25_s12, %s25_s12 }
   0xd   :  { %p458_p5 = scmp.ne.s32.totalorder %s25_s12, %s457_s16  ;;  %p463_p7 = scmp.lt.s32.totalorder %s457_s16, %s457_s16 }
   0xf   :  { %p464_p8 = por %p463_p7, %p462_p6 }
  0x11   :  { %p465_p9 = pnand %p464_p8, %p458_p5 }
  0x13   :  { %468 = shalt.err (!%p465_p9)
}
  0x14   :  { %s475_s17 = smov 128   ;;  %s476_s18 = smov 8  }
  0x15   :  { %30 = dma.hbm_to_vmem [thread:$0]  %s544_s1, 4480, %s25_s12, [#allocation5], %s475_s17, %s475_s17, %s476_s18  }
  0x16   :  { %469 = dma.done.wait [#allocation3], 128  }
  0x17   :  { %470 = vsyncadd [#allocation3], 4294967168 }
  0x18   :  { %471 = dma.done.wait [#allocation5], 4480  }
  0x19   :  { %472 = vsyncadd [#allocation5], 4294962816  ;;  %v477_v0 = vmov 0.0   ;;  %vm478_vm0 = vmmov 0   ;;  %v39_v1 = vld [vmem:[#allocation4 + $0x8] sm:$0xff]  ;;  %v38_v2 = vld [vmem:[#allocation4] sm:$0xff]  ;;  %v73_v33 = vlaneseq }
  0x1a   :  { %346 = vmatprep.subr.mxu0 %v477_v0  ;;  %350 = vmatprep.mubr.msk.f32.mxu0 %vm478_vm0, %v477_v0  ;;  %v37_v3 = vld [vmem:[#allocation2] sm:$0xff]  ;;  %vm77_vm1 = vcmask 130048   ;;  %v55_v4 = vld [vmem:[#allocation4 + $0x88] sm:$0xff]  ;;  %v54_v5 = vld [vmem:[#allocation4 + $0x80] sm:$0xff] }
  0x1b   :  { %353 = vmatprep.subr.mxu1 %v477_v0  ;;  %385 = vmatprep.mubr.msk.f32.mxu1 %vm478_vm0, %v477_v0  ;;  %v53_v6 = vld [vmem:[#allocation4 + $0x78] sm:$0xff]  ;;  %v52_v7 = vld [vmem:[#allocation4 + $0x70] sm:$0xff]  ;;  %v51_v8 = vld [vmem:[#allocation4 + $0x68] sm:$0xff]  ;;  %v74_v34 = vshrl.u32 %v73_v33, 7 }
  0x1c   :  { %347 = vmatpush3.msra.mxu0 %v39_v1  ;;  %354 = vmatpush3.msra.mxu1 %v55_v4  ;;  %v50_v9 = vld [vmem:[#allocation4 + $0x60] sm:$0xff]  ;;  %v49_v10 = vld [vmem:[#allocation4 + $0x58] sm:$0xff]  ;;  %v48_v11 = vld [vmem:[#allocation4 + $0x50] sm:$0xff] }
  0x1d   :  { %348 = vmatprep.subr.mxu0 %v477_v0  ;;  %355 = vmatprep.subr.mxu1 %v477_v0  ;;  %v47_v12 = vld [vmem:[#allocation4 + $0x48] sm:$0xff]  ;;  %v46_v13 = vld [vmem:[#allocation4 + $0x40] sm:$0xff]  ;;  %v45_v14 = vld [vmem:[#allocation4 + $0x38] sm:$0xff]  ;;  %v75_v35 = vsub.s32 0, %v74_v34  ;;  %v154_v45 = vsub.s32 1, %v74_v34  ;;  %v229_v51 = vsub.s32 2, %v74_v34 }
  0x1e   :  { %349 = vmatpush3.msra.mxu0 %v38_v2  ;;  %356 = vmatpush3.msra.mxu1 %v54_v5  ;;  %v44_v15 = vld [vmem:[#allocation4 + $0x30] sm:$0xff]  ;;  %v43_v16 = vld [vmem:[#allocation4 + $0x28] sm:$0xff]  ;;  %v42_v17 = vld [vmem:[#allocation4 + $0x20] sm:$0xff] }
  0x1f   :  { %351 = vmatmul.mubr.msk.f32.vlgmr.msra.gmra.mxu0 %vm77_vm1, %v37_v3  ;;  %357 = vmatprep.subr.mxu1 %v477_v0  ;;  %v41_v18 = vld [vmem:[#allocation4 + $0x18] sm:$0xff]  ;;  %v40_v19 = vld [vmem:[#allocation4 + $0x10] sm:$0xff]  ;;  %v71_v20 = vld [vmem:[#allocation4 + $0x108] sm:$0xff] }
  0x20   :  { %388 = vmatprep.subr.mxu0 %v477_v0  ;;  %358 = vmatpush3.msra.mxu1 %v53_v6  ;;  %v70_v21 = vld [vmem:[#allocation4 + $0x100] sm:$0xff]  ;;  %v69_v22 = vld [vmem:[#allocation4 + $0xf8] sm:$0xff]  ;;  %v68_v23 = vld [vmem:[#allocation4 + $0xf0] sm:$0xff] }
  0x21   :  { %420 = vmatprep.mubr.msk.f32.mxu0 %vm478_vm0, %v477_v0  ;;  %359 = vmatprep.subr.mxu1 %v477_v0  ;;  %v67_v24 = vld [vmem:[#allocation4 + $0xe8] sm:$0xff]  ;;  %v66_v25 = vld [vmem:[#allocation4 + $0xe0] sm:$0xff]  ;;  %v65_v26 = vld [vmem:[#allocation4 + $0xd8] sm:$0xff] }
  0x22   :  { %360 = vmatpush3.msra.mxu1 %v52_v7  ;;  %389 = vmatpush3.msra.mxu0 %v71_v20  ;;  %v64_v27 = vld [vmem:[#allocation4 + $0xd0] sm:$0xff]  ;;  %v63_v28 = vld [vmem:[#allocation4 + $0xc8] sm:$0xff]  ;;  %v62_v29 = vld [vmem:[#allocation4 + $0xc0] sm:$0xff] }
  0x23   :  { %361 = vmatprep.subr.mxu1 %v477_v0  ;;  %390 = vmatprep.subr.mxu0 %v477_v0  ;;  %v61_v30 = vld [vmem:[#allocation4 + $0xb8] sm:$0xff]  ;;  %v60_v31 = vld [vmem:[#allocation4 + $0xb0] sm:$0xff]  ;;  %v59_v32 = vld [vmem:[#allocation4 + $0xa8] sm:$0xff] }
  0x24   :  { %362 = vmatpush3.msra.mxu1 %v51_v8  ;;  %391 = vmatpush3.msra.mxu0 %v70_v21  ;;  %v72_v36 = vld [vmem:[#allocation4 + $0x110] sm:$0x7]  ;;  %v58_v42 = vld [vmem:[#allocation4 + $0xa0] sm:$0xff]  ;;  %v57_v43 = vld [vmem:[#allocation4 + $0x98] sm:$0xff] }
  0x25   :  { %363 = vmatprep.subr.mxu1 %v477_v0  ;;  %392 = vmatprep.subr.mxu0 %v477_v0  ;;  %v76_v37 = vrot.slane %v72_v36, %v75_v35  ;;  %v56_v44 = vld [vmem:[#allocation4 + $0x90] sm:$0xff]  ;;  %v155_v46 = vrot.slane %v72_v36, %v154_v45  ;;  %v230_v52 = vrot.slane %v72_v36, %v229_v51 }
  0x26   :  { %364 = vmatpush3.msra.mxu1 %v50_v9  ;;  %393 = vmatpush3.msra.mxu0 %v69_v22 }
  0x27   :  { %365 = vmatprep.subr.mxu1 %v477_v0  ;;  %394 = vmatprep.subr.mxu0 %v477_v0 }
  0x28   :  { %366 = vmatpush3.msra.mxu1 %v49_v10  ;;  %395 = vmatpush3.msra.mxu0 %v68_v23 }
  0x29   :  { %367 = vmatprep.subr.mxu1 %v477_v0  ;;  %396 = vmatprep.subr.mxu0 %v477_v0 }
  0x2a   :  { %368 = vmatpush3.msra.mxu1 %v48_v11  ;;  %397 = vmatpush3.msra.mxu0 %v67_v24 }
  0x2b   :  { %369 = vmatprep.subr.mxu1 %v477_v0  ;;  %398 = vmatprep.subr.mxu0 %v477_v0 }
  0x2c   :  { %370 = vmatpush3.msra.mxu1 %v47_v12  ;;  %399 = vmatpush3.msra.mxu0 %v66_v25 }
  0x2d   :  { %371 = vmatprep.subr.mxu1 %v477_v0  ;;  %400 = vmatprep.subr.mxu0 %v477_v0 }
  0x2e   :  { %372 = vmatpush3.msra.mxu1 %v46_v13  ;;  %401 = vmatpush3.msra.mxu0 %v65_v26 }
  0x2f   :  { %373 = vmatprep.subr.mxu1 %v477_v0  ;;  %402 = vmatprep.subr.mxu0 %v477_v0 }
  0x30   :  { %374 = vmatpush3.msra.mxu1 %v45_v14  ;;  %403 = vmatpush3.msra.mxu0 %v64_v27 }
  0x31   :  { %375 = vmatprep.subr.mxu1 %v477_v0  ;;  %404 = vmatprep.subr.mxu0 %v477_v0 }
  0x32   :  { %376 = vmatpush3.msra.mxu1 %v44_v15  ;;  %405 = vmatpush3.msra.mxu0 %v63_v28 }
  0x33   :  { %377 = vmatprep.subr.mxu1 %v477_v0  ;;  %406 = vmatprep.subr.mxu0 %v477_v0 }
  0x34   :  { %378 = vmatpush3.msra.mxu1 %v43_v16  ;;  %407 = vmatpush3.msra.mxu0 %v62_v29 }
  0x35   :  { %379 = vmatprep.subr.mxu1 %v477_v0  ;;  %408 = vmatprep.subr.mxu0 %v477_v0 }
  0x36   :  { %380 = vmatpush3.msra.mxu1 %v42_v17  ;;  %409 = vmatpush3.msra.mxu0 %v61_v30 }
  0x37   :  { %381 = vmatprep.subr.mxu1 %v477_v0  ;;  %410 = vmatprep.subr.mxu0 %v477_v0 }
  0x38   :  { %382 = vmatpush3.msra.mxu1 %v41_v18  ;;  %411 = vmatpush3.msra.mxu0 %v60_v31 }
  0x39   :  { %383 = vmatprep.subr.mxu1 %v477_v0  ;;  %412 = vmatprep.subr.mxu0 %v477_v0 }
  0x3a   :  { %384 = vmatpush3.msra.mxu1 %v40_v19  ;;  %413 = vmatpush3.msra.mxu0 %v59_v32 }
  0x3b   :  { %414 = vmatprep.subr.mxu0 %v477_v0 }
  0x3c   :  { %415 = vmatpush3.msra.mxu0 %v58_v42 }
  0x3d   :  { %416 = vmatprep.subr.mxu0 %v477_v0 }
  0x3e   :  { %417 = vmatpush3.msra.mxu0 %v57_v43 }
  0x3f   :  { %418 = vmatprep.subr.mxu0 %v477_v0 }
  0x40   :  { %419 = vmatpush3.msra.mxu0 %v56_v44 }
  0xdf   :  { %v147_v38 = vpop.f32.mrf.mxu0 }
  0xe0   :  { %v148_v39 = vadd.f32 %v147_v38, %v76_v37 }
  0xe1   :  { %v352_v40 = vpop.f32.mrf.mxu0 }
  0xe2   :  { %v151_v41 = vmax.f32 %v148_v39, 0.0 }
  0xe4   :  { %386 = vmatmul.mubr.f32.vlgmr.msra.gmra.mxu1 %v151_v41 }
 0x1a4   :  { %v222_v47 = vpop.f32.mrf.mxu1 }
 0x1a5   :  { %v223_v48 = vadd.f32 %v222_v47, %v155_v46 }
 0x1a6   :  { %v387_v49 = vpop.f32.mrf.mxu1 }
 0x1a7   :  { %v226_v50 = vmax.f32 %v223_v48, 0.0 }
 0x1a9   :  { %421 = vmatmul.mubr.f32.vlgmr.msra.gmra.mxu0 %v226_v50 }
 0x269   :  { %v297_v53 = vpop.f32.mrf.mxu0 }
 0x26a   :  { %v298_v54 = vadd.f32 %v297_v53, %v230_v52 }
 0x26b   :  { %v422_v55 = vpop.f32.mrf.mxu0 }
 0x26c   :  { %301 = vst [vmem:[%s545_s2] sm:$0xff] %v298_v54 }
 0x26d   :  { %306 = vsyncpa [#allocation3], 1 }
 0x26e   :  { %307 = vsyncpa [#allocation5], 1 }

</bundles_post_ra>
